<compile_context>
chip_gen: v5e
topology: v5e:2x2
jax: 0.10.0
libtpu: 0.0.40
codegen_flags: <defaults>
</compile_context>

<pallas_src>
import functools

import jax
import jax.numpy as jnp
from jax.experimental import pallas as pl
from jax.experimental.pallas import tpu as pltpu


# ----------------------------------------------------------------------------
# Helpers
# ----------------------------------------------------------------------------
def _choose_row_group(H: int, W: int, s: int) -> int:
    """Pick f (f | H): number of input rows folded into one matmul row.

    Goal: output row width K*s*s >= 256 lanes (lane-dense stores, good MXU
    packing), preferring multiples of 128, while keeping the one-hot
    replication matrix (K x K*s*s, bf16) small.
    """
    cap_bytes = 4 * 1024 * 1024
    divisors = [d for d in range(1, H + 1) if H % d == 0]

    def mat_bytes(f):
        k = f * W
        return k * (k * s * s) * 2  # bf16

    good = [d for d in divisors
            if d * W * s * s >= 256 and mat_bytes(d) <= cap_bytes]
    aligned = [d for d in good if (d * W * s * s) % 128 == 0]
    if aligned:
        return aligned[0]
    if good:
        return good[0]
    ok = [d for d in divisors if mat_bytes(d) <= cap_bytes]
    return ok[-1] if ok else 1


def _replication_matrix(W: int, f: int, s: int, dtype) -> jax.Array:
    """One-hot (K, K*s*s) matrix R with R[src(m), m] = 1, K = f*W.

    For a group of f input rows (flattened to length K), output element
    m = u*(s*W*s) + q*(W*s) + k*s + t  reads input element  u*W + k.
    """
    K = f * W
    n_out = K * s * s
    m = jnp.arange(n_out)
    src = (m // (s * W * s)) * W + (m % (W * s)) // s
    return (src[None, :] == jnp.arange(K)[:, None]).astype(dtype)


def _choose_tile_rows(M: int, K: int, n_out: int, itemsize: int,
                      num_limbs: int) -> int:
    """Largest row-tile (multiple of 8) that keeps VMEM usage modest."""
    budget = 16 * 1024 * 1024                      # buffers + intermediates
    per_row = 2 * (K + n_out) * itemsize           # double-buffered in/out
    per_row += num_limbs * (K * 2 + n_out * 4)     # bf16 limbs + f32 partials
    tm = budget // per_row
    tm = max(8, min(int(tm), 4096))
    tm -= tm % 8
    m_pad = ((M + 7) // 8) * 8
    return min(tm, m_pad)


# ----------------------------------------------------------------------------
# Kernel
# ----------------------------------------------------------------------------
def _upsample_matmul_kernel(x_ref, r_ref, o_ref, *, num_limbs: int):
    x = x_ref[...]                                 # (TM, K)
    rep = r_ref[...]                               # (K, n_out) one-hot, bf16

    if num_limbs == 1:
        # bf16 input: a single exact MXU pass (f32 accumulation).
        y = jnp.dot(x.astype(jnp.bfloat16), rep,
                    preferred_element_type=jnp.float32)
    else:
        # f32 input: exact 3-limb bf16 decomposition, x == a + b + c.
        a = x.astype(jnp.bfloat16)
        r1 = x - a.astype(jnp.float32)
        b = r1.astype(jnp.bfloat16)
        r2 = r1 - b.astype(jnp.float32)
        c = r2.astype(jnp.bfloat16)
        # (b+c) first, then +a: reconstructs x bit-exactly through the one-hot.
        tail = (jnp.dot(b, rep, preferred_element_type=jnp.float32)
                + jnp.dot(c, rep, preferred_element_type=jnp.float32))
        y = jnp.dot(a, rep, preferred_element_type=jnp.float32) + tail

    o_ref[...] = y.astype(o_ref.dtype)


# ----------------------------------------------------------------------------
# Wrapper
# ----------------------------------------------------------------------------
@functools.partial(jax.jit, static_argnums=(1,))
def upsample_nearest(x: jax.Array, scale_factor) -> jax.Array:
    """Nearest-neighbor upsample of an NCHW tensor by an integer factor."""
    s = int(scale_factor)
    if float(s) != float(scale_factor) or s < 1:
        raise NotImplementedError("only integer scale_factor >= 1 is supported")

    if x.dtype == jnp.float32:
        num_limbs = 3
    elif x.dtype == jnp.bfloat16:
        num_limbs = 1
    else:
        raise NotImplementedError(f"unsupported dtype {x.dtype}")

    N, C, H, W = x.shape
    if s == 1:
        return x

    f = _choose_row_group(H, W, s)
    K = f * W
    n_out = K * s * s
    M = (N * C * H) // f
    itemsize = jnp.dtype(x.dtype).itemsize
    tm = _choose_tile_rows(M, K, n_out, itemsize, num_limbs)

    # Free, row-major metadata reshapes (same underlying layout).
    x2 = x.reshape(M, K)
    rep = _replication_matrix(W, f, s, jnp.bfloat16)

    kernel = functools.partial(_upsample_matmul_kernel, num_limbs=num_limbs)
    flops = 2 * M * K * n_out * num_limbs
    bytes_accessed = M * K * itemsize + K * n_out * 2 + M * n_out * itemsize

    out2 = pl.pallas_call(
        kernel,
        out_shape=jax.ShapeDtypeStruct((M, n_out), x.dtype),
        grid_spec=pltpu.PrefetchScalarGridSpec(
            num_scalar_prefetch=0,
            grid=(pl.cdiv(M, tm),),
            in_specs=[
                pl.BlockSpec((tm, K), lambda i: (i, 0)),        # input rows
                pl.BlockSpec((K, n_out), lambda i: (0, 0)),     # one-hot, resident
            ],
            out_specs=pl.BlockSpec((tm, n_out), lambda i: (i, 0)),
        ),
        compiler_params=pltpu.CompilerParams(
            dimension_semantics=("parallel",),
            vmem_limit_bytes=32 * 1024 * 1024,
        ),
        cost_estimate=pl.CostEstimate(
            flops=flops, transcendentals=0, bytes_accessed=bytes_accessed),
    )(x2, rep)

    return out2.reshape(N, C, H * s, W * s)


class Upsample:
    """Mirror of the PyTorch module (mode='nearest', integer scale_factor)."""

    def __init__(self, scale_factor, mode="nearest"):
        if mode != "nearest":
            raise NotImplementedError("only mode='nearest' is implemented")
        self.scale_factor = scale_factor
        self.mode = mode

    def __call__(self, x):
        return upsample_nearest(x, self.scale_factor)


def upsample_nearest_ref(x: jax.Array, scale_factor: int) -> jax.Array:
    """Pure-JAX reference matching F.interpolate(mode='nearest')."""
    s = int(scale_factor)
    y = jnp.repeat(x, s, axis=2)
    y = jnp.repeat(y, s, axis=3)
    return y


# ----------------------------------------------------------------------------
# Self-test
# ----------------------------------------------------------------------------
if __name__ == "__main__":
    key = jax.random.PRNGKey(0)
    k0, k1 = jax.random.split(key)

    # Primary config: Upsample(scale_factor=2, mode='nearest') on (2, 4, 16, 16).
    N, C, H, W = 2, 4, 16, 16
    scale = 2
    x = jax.random.normal(k0, (N, C, H, W), dtype=jnp.float32)

    model = Upsample(scale_factor=scale, mode="nearest")
    out = jax.block_until_ready(model(x))
    ref = upsample_nearest_ref(x, scale)
    assert out.shape == (N, C, H * scale, W * scale)
    assert jnp.allclose(out, ref), "mismatch vs reference nearest upsample"

    # Secondary sanity check: different scale / shape (exercises another f, K).
    x2 = jax.random.normal(k1, (2, 2, 8, 8), dtype=jnp.float32)
    out2 = jax.block_until_ready(upsample_nearest(x2, 3))
    ref2 = upsample_nearest_ref(x2, 3)
    assert out2.shape == (2, 2, 24, 24)
    assert jnp.allclose(out2, ref2), "mismatch vs reference (scale=3)"

    print("KERNEL_OK")
</pallas_src>

<mosaic_0001>
module attributes {stable_mosaic.version = 11 : i64} {
  func.func @_upsample_matmul_kernel(%arg0: i32, %arg1: memref<32x64xf32, #tpu.memory_space<vmem>>, %arg2: memref<64x256xbf16, #tpu.memory_space<vmem>>, %arg3: memref<32x256xf32, #tpu.memory_space<vmem>>) attributes {dimension_semantics = [#tpu.dimension_semantics<parallel>], iteration_bounds = array<i64: 1>, scalar_prefetch = 0 : i64, scratch_operands = 0 : i64, tpu.core_type = #tpu.core_type<tc>, window_params = [{transform_indices = @transform_0, window_bounds = array<i64: 32, 64>}, {pipeline_mode = #tpu.pipeline_mode<synchronous>, transform_indices = @transform_1, window_bounds = array<i64: 64, 256>}, {transform_indices = @transform_2, window_bounds = array<i64: 32, 256>}]} {
    %c0 = arith.constant 0 : index
    %c0_0 = arith.constant 0 : index
    %0 = vector.load %arg1[%c0, %c0_0] : memref<32x64xf32, #tpu.memory_space<vmem>>, vector<32x64xf32>
    %c0_1 = arith.constant 0 : index
    %c0_2 = arith.constant 0 : index
    %1 = vector.load %arg2[%c0_1, %c0_2] : memref<64x256xbf16, #tpu.memory_space<vmem>>, vector<64x256xbf16>
    %2 = arith.truncf %0 : vector<32x64xf32> to vector<32x64xbf16>
    %3 = arith.extf %2 : vector<32x64xbf16> to vector<32x64xf32>
    %4 = arith.subf %0, %3 : vector<32x64xf32>
    %5 = arith.truncf %4 : vector<32x64xf32> to vector<32x64xbf16>
    %6 = arith.extf %5 : vector<32x64xbf16> to vector<32x64xf32>
    %7 = arith.subf %4, %6 : vector<32x64xf32>
    %8 = arith.truncf %7 : vector<32x64xf32> to vector<32x64xbf16>
    %cst = arith.constant dense<0.000000e+00> : vector<32x256xf32>
    %9 = tpu.matmul %5, %1, %cst {dimension_numbers = #tpu.dot_dimension_numbers<[1], [0], [0], [1], [0, 0, 1, 1], [], []>} : vector<32x64xbf16>, vector<64x256xbf16>, vector<32x256xf32> -> vector<32x256xf32>
    %cst_3 = arith.constant dense<0.000000e+00> : vector<32x256xf32>
    %10 = tpu.matmul %8, %1, %cst_3 {dimension_numbers = #tpu.dot_dimension_numbers<[1], [0], [0], [1], [0, 0, 1, 1], [], []>} : vector<32x64xbf16>, vector<64x256xbf16>, vector<32x256xf32> -> vector<32x256xf32>
    %11 = arith.addf %9, %10 : vector<32x256xf32>
    %cst_4 = arith.constant dense<0.000000e+00> : vector<32x256xf32>
    %12 = tpu.matmul %2, %1, %cst_4 {dimension_numbers = #tpu.dot_dimension_numbers<[1], [0], [0], [1], [0, 0, 1, 1], [], []>} : vector<32x64xbf16>, vector<64x256xbf16>, vector<32x256xf32> -> vector<32x256xf32>
    %13 = arith.addf %12, %11 : vector<32x256xf32>
    %c0_5 = arith.constant 0 : index
    %c0_6 = arith.constant 0 : index
    %14 = vector.load %arg3[%c0_5, %c0_6] : memref<32x256xf32, #tpu.memory_space<vmem>>, vector<32x256xf32>
    tpu.vector_store %arg3[%c0_5, %c0_6], %13 {strides = array<i32>} : memref<32x256xf32, #tpu.memory_space<vmem>>, vector<32x256xf32>,
    return
  }
  func.func @transform_0(%arg0: i32) -> (i32, i32) {
    %c0_i32 = arith.constant 0 : i32
    %c0_i32_0 = arith.constant 0 : i32
    return %arg0, %c0_i32 : i32, i32
  }
  func.func @transform_1(%arg0: i32) -> (i32, i32) {
    %c0_i32 = arith.constant 0 : i32
    %c0_i32_0 = arith.constant 0 : i32
    %c0_i32_1 = arith.constant 0 : i32
    return %c0_i32, %c0_i32_0 : i32, i32
  }
  func.func @transform_2(%arg0: i32) -> (i32, i32) {
    %c0_i32 = arith.constant 0 : i32
    %c0_i32_0 = arith.constant 0 : i32
    return %arg0, %c0_i32 : i32, i32
  }
}

</mosaic_0001>

<bundles_post_ra>
// kernel: upsample_nearest.1
= control target key start
LH: loop header
LB: loop body
LE: loop exit
PB: predicated region body
PF: predicated region fallthrough
CT: control target
= control target key end

     0   :  { %vm90_vm0 = vcmask 523264   ;;  %s466_s1 = inlined_call_operand.vmem [shape: bf16[64,256], index: 1, kind: input, shape index: {}]   ;;  %s467_s0 = inlined_call_operand.vmem [shape: f32[32,64], index: 0, kind: input, shape index: {}]   ;;  %s468_s2 = inlined_call_operand.vmem [shape: f32[32,256], index: 2, kind: output, shape index: {}]  }
   0x1   :  { %v281_v0 = vld [vmem:[%s466_s1 + $0x30] sm:$0xf]  ;;  %v306_v1 = vld [vmem:[%s466_s1 + $0x34] sm:$0xf0]  ;;  %v305_v2 = vld [vmem:[%s466_s1 + $0x34] sm:$0xf] }
   0x2   :  { %v339_v3 = vor.u32 %v306_v1, %v281_v0  ;;  %v283_v4 = vld [vmem:[%s466_s1 + $0x38] sm:$0xf0]  ;;  %v273_v5 = vld [vmem:[%s466_s1 + $0x20] sm:$0xf]  ;;  %v304_v6 = vld [vmem:[%s466_s1 + $0x24] sm:$0xf0] }
   0x3   :  { %v350_v7 = vor.u32 %v305_v2, %v283_v4  ;;  %v303_v8 = vld [vmem:[%s466_s1 + $0x24] sm:$0xf]  ;;  %v275_v9 = vld [vmem:[%s466_s1 + $0x28] sm:$0xf0]  ;;  %v360_v10 = vor.u32 %v304_v6, %v273_v5  ;;  %v265_v12 = vld [vmem:[%s466_s1 + $0x10] sm:$0xf] }
   0x4   :  { %101 = vmatpush.bf16.msra.mxu0 %v339_v3  ;;  %307 = vmatpush.bf16.msra.mxu2 %v339_v3  ;;  %v364_v11 = vor.u32 %v303_v8, %v275_v9  ;;  %v302_v13 = vld [vmem:[%s466_s1 + $0x14] sm:$0xf0]  ;;  %v301_v14 = vld [vmem:[%s466_s1 + $0x14] sm:$0xf]  ;;  %v267_v15 = vld [vmem:[%s466_s1 + $0x18] sm:$0xf0] }
   0x5   :  { %120 = vmatpush.bf16.msra.mxu1 %v350_v7  ;;  %311 = vmatpush.bf16.msra.mxu3 %v350_v7  ;;  %v12_v16 = vld [vmem:[%s467_s0] sm:$0xff]  ;;  %v13_v17 = vld [vmem:[%s467_s0 + $0x8] sm:$0xff]  ;;  %v14_v20 = vld [vmem:[%s467_s0 + $0x10] sm:$0xff]  ;;  %v266_v22 = vor.u32 %v302_v13, %v265_v12  ;;  %v270_v25 = vor.u32 %v301_v14, %v267_v15 }
   0x6   :  { %v384_v18 = vpack.c.bf16 %v12_v16, %v12_v16  ;;  %v386_v19 = vpack.c.bf16 %v13_v17, %v13_v17  ;;  %v15_v21 = vld [vmem:[%s467_s0 + $0x18] sm:$0xff]  ;;  %v396_v23 = vpack.c.bf16 %v14_v20, %v14_v20  ;;  %v257_v26 = vld [vmem:[%s466_s1] sm:$0xf]  ;;  %v300_v27 = vld [vmem:[%s466_s1 + $0x4] sm:$0xf0] }
   0x7   :  { %v398_v24 = vpack.c.bf16 %v15_v21, %v15_v21  ;;  %v299_v30 = vld [vmem:[%s466_s1 + $0x4] sm:$0xf]  ;;  %v259_v31 = vld [vmem:[%s466_s1 + $0x8] sm:$0xf0]  ;;  %v258_v36 = vor.u32 %v300_v27, %v257_v26 }
   0x8   :  { %102 = vmatpush.bf16.msra.mxu0 %v360_v10  ;;  %308 = vmatpush.bf16.msra.mxu2 %v360_v10  ;;  %v28_v28 = vunpack.c.l.bf16 %v384_v18  ;;  %v29_v29 = vunpack.c.l.bf16 %v386_v19  ;;  %v30_v32 = vunpack.c.l.bf16 %v396_v23  ;;  %v262_v39 = vor.u32 %v299_v30, %v259_v31 }
   0x9   :  { %121 = vmatpush.bf16.msra.mxu1 %v364_v11  ;;  %312 = vmatpush.bf16.msra.mxu3 %v364_v11  ;;  %v31_v33 = vunpack.c.l.bf16 %v398_v24  ;;  %v193_v54 = vunpack.c.l.b16 %v384_v18  ;;  %v194_v55 = vunpack.c.l.b16 %v386_v19  ;;  %v195_v60 = vunpack.c.l.b16 %v396_v23 }
   0xa   :  { %v32_v34 = vsub.f32 %v12_v16, %v28_v28  ;;  %v33_v35 = vsub.f32 %v13_v17, %v29_v29  ;;  %v34_v37 = vsub.f32 %v14_v20, %v30_v32  ;;  %v196_v61 = vunpack.c.l.b16 %v398_v24 }
   0xb   :  { %v35_v38 = vsub.f32 %v15_v21, %v31_v33  ;;  %v197_v58 = vpack.c.b16 %v194_v55, %v193_v54 }
   0xc   :  { %103 = vmatpush.bf16.msra.mxu0 %v266_v22  ;;  %309 = vmatpush.bf16.msra.mxu2 %v266_v22  ;;  %v36_v40 = vpack.c.bf16 %v32_v34, %v32_v34  ;;  %v37_v41 = vpack.c.bf16 %v33_v35, %v33_v35  ;;  %v38_v42 = vpack.c.bf16 %v34_v37, %v34_v37 }
   0xd   :  { %122 = vmatpush.bf16.msra.mxu1 %v270_v25  ;;  %313 = vmatpush.bf16.msra.mxu3 %v270_v25  ;;  %v39_v43 = vpack.c.bf16 %v35_v38, %v35_v38  ;;  %v198_v0 = vpack.c.b16 %v196_v61, %v195_v60 }
   0xe   :  { %v40_v44 = vunpack.c.l.bf16 %v36_v40  ;;  %v41_v45 = vunpack.c.l.bf16 %v37_v41  ;;  %v42_v46 = vunpack.c.l.bf16 %v38_v42  ;;  %v139_v56 = vunpack.c.l.b16 %v36_v40 }
   0xf   :  { %v43_v47 = vunpack.c.l.bf16 %v39_v43  ;;  %v140_v57 = vunpack.c.l.b16 %v37_v41  ;;  %v141_v62 = vunpack.c.l.b16 %v38_v42  ;;  %v142_v63 = vunpack.c.l.b16 %v39_v43 }
  0x10   :  { %104 = vmatpush.bf16.msra.mxu0 %v258_v36  ;;  %310 = vmatpush.bf16.msra.mxu2 %v258_v36  ;;  %v44_v48 = vsub.f32 %v32_v34, %v40_v44  ;;  %v45_v49 = vsub.f32 %v33_v35, %v41_v45  ;;  %v46_v50 = vsub.f32 %v34_v37, %v42_v46 }
  0x11   :  { %123 = vmatpush.bf16.msra.mxu1 %v262_v39  ;;  %314 = vmatpush.bf16.msra.mxu3 %v262_v39  ;;  %v47_v51 = vsub.f32 %v35_v38, %v43_v47  ;;  %v143_v59 = vpack.c.b16 %v140_v57, %v139_v56  ;;  %v144_v1 = vpack.c.b16 %v142_v63, %v141_v62 }
  0x12   :  { %v48_v52 = vpack.c.bf16 %v45_v49, %v44_v48 }
  0x13   :  { %v49_v53 = vpack.c.bf16 %v47_v51, %v46_v50 }
  0x14   :  { %155 = vmatpush.bf16.msrb.mxu2 %v339_v3  ;;  %209 = vmatpush.bf16.msrb.mxu0 %v339_v3 }
  0x15   :  { %174 = vmatpush.bf16.msrb.mxu3 %v350_v7  ;;  %228 = vmatpush.bf16.msrb.mxu1 %v350_v7 }
  0x16   :  { %287 = vmatmul.msk.bf16.vlgmr.msra.gmra.mxu0 %vm90_vm0, %v48_v52  ;;  %289 = vmatmul.msk.bf16.vlgmr.msra.gmra.mxu1 %vm90_vm0, %v48_v52 }
  0x17   :  { %288 = vmatmul.msk.bf16.vlgmr.msra.gmra.mxu2 %vm90_vm0, %v49_v53  ;;  %290 = vmatmul.msk.bf16.vlgmr.msra.gmra.mxu3 %vm90_vm0, %v49_v53 }
  0x18   :  { %156 = vmatpush.bf16.msrb.mxu2 %v360_v10  ;;  %210 = vmatpush.bf16.msrb.mxu0 %v360_v10 }
  0x19   :  { %175 = vmatpush.bf16.msrb.mxu3 %v364_v11  ;;  %229 = vmatpush.bf16.msrb.mxu1 %v364_v11 }
  0x1c   :  { %157 = vmatpush.bf16.msrb.mxu2 %v266_v22  ;;  %211 = vmatpush.bf16.msrb.mxu0 %v266_v22 }
  0x1d   :  { %176 = vmatpush.bf16.msrb.mxu3 %v270_v25  ;;  %230 = vmatpush.bf16.msrb.mxu1 %v270_v25 }
  0x20   :  { %158 = vmatpush.bf16.msrb.mxu2 %v258_v36  ;;  %212 = vmatpush.bf16.msrb.mxu0 %v258_v36 }
  0x21   :  { %177 = vmatpush.bf16.msrb.mxu3 %v262_v39  ;;  %231 = vmatpush.bf16.msrb.mxu1 %v262_v39 }
  0x26   :  { %295 = vmatmul.msk.bf16.vlgmr.msrb.gmra.mxu0 %vm90_vm0, %v197_v58  ;;  %297 = vmatmul.msk.bf16.vlgmr.msrb.gmra.mxu1 %vm90_vm0, %v197_v58 }
  0x27   :  { %291 = vmatmul.msk.bf16.vlgmr.msrb.gmra.mxu2 %vm90_vm0, %v143_v59  ;;  %293 = vmatmul.msk.bf16.vlgmr.msrb.gmra.mxu3 %vm90_vm0, %v143_v59 }
  0x36   :  { %296 = vmatmul.msk.bf16.gmra.mxu0 %vm90_vm0, %v198_v0  ;;  %298 = vmatmul.msk.bf16.gmra.mxu1 %vm90_vm0, %v198_v0 }
  0x37   :  { %292 = vmatmul.msk.bf16.gmra.mxu2 %vm90_vm0, %v144_v1  ;;  %294 = vmatmul.msk.bf16.gmra.mxu3 %vm90_vm0, %v144_v1 }
  0x93   :  { %v106_v2 = vpop.f32.mrf.mxu0  ;;  %v125_v3 = vpop.f32.mrf.mxu1 }
  0x9a   :  { %v111_v4 = vpop.f32.mrf.mxu2  ;;  %v130_v5 = vpop.f32.mrf.mxu3 }
  0x9b   :  { %v108_v6 = vpop.f32.mrf.mxu0  ;;  %v127_v7 = vpop.f32.mrf.mxu1 }
  0xa2   :  { %v113_v8 = vpop.f32.mrf.mxu2  ;;  %v132_v9 = vpop.f32.mrf.mxu3 }
  0xa3   :  { %v214_v10 = vpop.f32.mrf.mxu0  ;;  %v233_v11 = vpop.f32.mrf.mxu1 }
  0xaa   :  { %v160_v12 = vpop.f32.mrf.mxu2  ;;  %v179_v13 = vpop.f32.mrf.mxu3 }
  0xab   :  { %v161_v14 = vadd.f32 %v160_v12, %v106_v2  ;;  %v180_v15 = vadd.f32 %v179_v13, %v125_v3  ;;  %v216_v18 = vpop.f32.mrf.mxu0  ;;  %v235_v19 = vpop.f32.mrf.mxu1 }
  0xad   :  { %v215_v16 = vadd.f32 %v214_v10, %v161_v14  ;;  %v234_v17 = vadd.f32 %v233_v11, %v180_v15 }
  0xaf   :  { %243 = vst [vmem:[%s468_s2] sm:$0xff] %v215_v16 }
  0xb0   :  { %244 = vst [vmem:[%s468_s2 + $0x8] sm:$0xff] %v234_v17 }
  0xb2   :  { %v162_v20 = vpop.f32.mrf.mxu2  ;;  %v181_v21 = vpop.f32.mrf.mxu3 }
  0xb3   :  { %v163_v22 = vadd.f32 %v162_v20, %v108_v6  ;;  %v182_v23 = vadd.f32 %v181_v21, %v127_v7  ;;  %v219_v26 = vpop.f32.mrf.mxu0  ;;  %v238_v27 = vpop.f32.mrf.mxu1 }
  0xb5   :  { %v217_v24 = vadd.f32 %v216_v18, %v163_v22  ;;  %v236_v25 = vadd.f32 %v235_v19, %v182_v23 }
  0xb7   :  { %245 = vst [vmem:[%s468_s2 + $0x10] sm:$0xff] %v217_v24 }
  0xb8   :  { %246 = vst [vmem:[%s468_s2 + $0x18] sm:$0xff] %v236_v25 }
  0xba   :  { %v165_v28 = vpop.f32.mrf.mxu2  ;;  %v184_v29 = vpop.f32.mrf.mxu3 }
  0xbb   :  { %v166_v30 = vadd.f32 %v165_v28, %v111_v4  ;;  %v185_v31 = vadd.f32 %v184_v29, %v130_v5  ;;  %v221_v38 = vpop.f32.mrf.mxu0  ;;  %v240_v39 = vpop.f32.mrf.mxu1 }
  0xbd   :  { %v220_v32 = vadd.f32 %v219_v26, %v166_v30  ;;  %v239_v33 = vadd.f32 %v238_v27, %v185_v31 }
  0xbf   :  { %247 = vst [vmem:[%s468_s2 + $0x20] sm:$0xff] %v220_v32 }
  0xc0   :  { %248 = vst [vmem:[%s468_s2 + $0x28] sm:$0xff] %v239_v33 }
  0xc2   :  { %v167_v34 = vpop.f32.mrf.mxu2  ;;  %v186_v35 = vpop.f32.mrf.mxu3 }
  0xc3   :  { %v168_v36 = vadd.f32 %v167_v34, %v113_v8  ;;  %v187_v37 = vadd.f32 %v186_v35, %v132_v9 }
  0xc5   :  { %v222_v40 = vadd.f32 %v221_v38, %v168_v36  ;;  %v241_v41 = vadd.f32 %v240_v39, %v187_v37 }
  0xc7   :  { %249 = vst [vmem:[%s468_s2 + $0x30] sm:$0xff] %v222_v40 }
  0xc8   :  { %250 = vst [vmem:[%s468_s2 + $0x38] sm:$0xff] %v241_v41 }

</bundles_post_ra>
